<compile_context>
chip_gen: v7x
topology: tpu7x:2x2x1
jax: 0.10.0
libtpu: 0.0.40
codegen_flags: <defaults>
</compile_context>

<pallas_src>
import functools

import jax
import jax.numpy as jnp
from jax.experimental import pallas as pl
from jax.experimental.pallas import tpu as pltpu

K = 3               # kernel_size = 3 -> padding = 1
NEG_SLOPE = 0.01    # nn.LeakyReLU() default negative slope


def _pick_batch_block(n, cap=8):
    """Largest divisor of n that is <= cap (batch elements per grid step)."""
    for bb in range(min(n, cap), 0, -1):
        if n % bb == 0:
            return bb
    return 1


def _tree_sum(vals):
    """Balanced-tree add (shorter VPU dependency chain than a sequential fold)."""
    while len(vals) > 1:
        nxt = [vals[i] + vals[i + 1] for i in range(0, len(vals) - 1, 2)]
        if len(vals) % 2:
            nxt.append(vals[-1])
        vals = nxt
    return vals[0]


def _sa_kernel(x_ref, m_ref, w1_ref, b1_ref, w2_ref, b2_ref, o_ref, *, hp, wp):
    # x_ref : (bb, C, Spx)  bf16, frame flattened over the padded (Hp, Wp) grid,
    #                        with an extra 2*ext zero lanes on each side.
    # m_ref : (1, Sph)      f32, 1.0 on the un-padded interior, 0.0 elsewhere.
    # w1_ref: (9*Cm, C)     bf16, row = tap*Cm + c_out
    # b1_ref: (Cm, 1)       f32
    # w2_ref: (9, Cm)       bf16
    # b2_ref: (1, 1)        f32
    # o_ref : (bb, Sp)      f32, sigmoid output over the padded frame (interior valid)
    sp = hp * wp                 # padded-frame size
    ext = wp + 1                 # halo so every shifted window is a static in-bounds slice
    sph = sp + 2 * ext           # extended width of the hidden activations
    bb = x_ref.shape[0]
    cm = b1_ref.shape[0]
    # lane shift of the input position relative to the output position, per 3x3 tap
    shifts = [(dy - 1) * wp + (dx - 1) for dy in range(K) for dx in range(K)]

    mask = m_ref[...]            # (1, sph)
    w1p = w1_ref[...]            # (9*cm, C)
    w2p = w2_ref[...]            # (9, cm)
    b1 = b1_ref[...]             # (cm, 1)
    b2 = b2_ref[...]             # (1, 1)

    rows = []
    for b in range(bb):
        xw = x_ref[b]            # (C, spx) bf16

        # ---- conv1: one packed MXU matmul (taps stacked on output sublanes) ----
        y1 = jnp.dot(w1p, xw, preferred_element_type=jnp.float32)      # (9*cm, spx) f32
        acc1 = _tree_sum([
            y1[t * cm:(t + 1) * cm, ext + s: ext + s + sph]             # (cm, sph)
            for t, s in enumerate(shifts)
        ])
        z = acc1 + b1                                                   # bias (sublane bcast)
        h1 = mask * jnp.where(z > 0, z, NEG_SLOPE * z)                  # LeakyReLU + zero pad

        # ---- conv2: small channel-reduce matmul, then 9 shifted lane-window adds ----
        g = jnp.dot(w2p, h1.astype(jnp.bfloat16),
                    preferred_element_type=jnp.float32)                 # (9, sph) f32
        acc2 = _tree_sum([
            g[t:t + 1, ext + s: ext + s + sp]                           # (1, sp)
            for t, s in enumerate(shifts)
        ])
        rows.append(jax.nn.sigmoid(acc2 + b2))                          # (1, sp) f32

    # One dense (bb, sp) store per grid step (lane-dense, mostly unmasked vst).
    o_ref[...] = rows[0] if bb == 1 else jnp.concatenate(rows, axis=0)


@jax.jit
def spatial_attention1(x_nchw, w1, b1, w2, b2):
    """x_nchw: (N, C, H, W) f32; w1: (Cm, C, 3, 3); b1: (Cm,); w2: (1, Cm, 3, 3); b2: (1,).
    Returns (N, 1, H, W) f32, matching the PyTorch forward."""
    N, C, H, W = x_nchw.shape
    Cm = w1.shape[0]
    Hp, Wp = H + 2, W + 2
    Sp = Hp * Wp
    EXT = Wp + 1
    Sph = Sp + 2 * EXT
    Spx = Sp + 4 * EXT

    bb = _pick_batch_block(N)

    # Halo pad in the native NCHW layout (no transpose), flatten spatial, lane-halo, bf16.
    xp = jnp.pad(x_nchw, ((0, 0), (0, 0), (1, 1), (1, 1))).reshape(N, C, Sp)
    xw = jnp.pad(xp, ((0, 0), (0, 0), (2 * EXT, 2 * EXT))).astype(jnp.bfloat16)

    # Weight repacking (tap-major rows for conv1, tap rows for conv2).
    w1p = jnp.transpose(w1, (2, 3, 0, 1)).reshape(K * K * Cm, C).astype(jnp.bfloat16)
    w2p = jnp.transpose(w2[0], (1, 2, 0)).reshape(K * K, Cm).astype(jnp.bfloat16)
    b1p = b1.reshape(Cm, 1).astype(jnp.float32)
    b2p = b2.reshape(1, 1).astype(jnp.float32)

    # Interior mask over the extended flattened frame.
    m2d = jnp.zeros((Hp, Wp), jnp.float32).at[1:H + 1, 1:W + 1].set(1.0)
    maskh = jnp.pad(m2d.reshape(Sp), (EXT, EXT)).reshape(1, Sph)

    kernel = functools.partial(_sa_kernel, hp=Hp, wp=Wp)

    out_flat = pl.pallas_call(
        kernel,
        out_shape=jax.ShapeDtypeStruct((N, Sp), jnp.float32),
        grid_spec=pltpu.PrefetchScalarGridSpec(
            num_scalar_prefetch=0,
            grid=(N // bb,),
            in_specs=[
                pl.BlockSpec((bb, C, Spx), lambda n: (n, 0, 0)),
                pl.BlockSpec((1, Sph), lambda n: (0, 0)),
                pl.BlockSpec((K * K * Cm, C), lambda n: (0, 0)),
                pl.BlockSpec((Cm, 1), lambda n: (0, 0)),
                pl.BlockSpec((K * K, Cm), lambda n: (0, 0)),
                pl.BlockSpec((1, 1), lambda n: (0, 0)),
            ],
            out_specs=pl.BlockSpec((bb, Sp), lambda n: (n, 0)),
        ),
        compiler_params=pltpu.CompilerParams(
            dimension_semantics=("parallel",)),
    )(xw, maskh, w1p, b1p, w2p, b2p)

    # Tiny interior crop back to (N, 1, H, W) in plain JAX (output is 32x smaller than x).
    out = out_flat.reshape(N, Hp, Wp)[:, 1:H + 1, 1:W + 1]
    return out.reshape(N, 1, H, W)


def ref_forward(x, w1, b1, w2, b2):
    """Pure-JAX f32 reference mirroring the PyTorch module."""
    dn = ("NCHW", "OIHW", "NCHW")
    y = jax.lax.conv_general_dilated(x, w1, (1, 1), ((1, 1), (1, 1)),
                                     dimension_numbers=dn) + b1.reshape(1, -1, 1, 1)
    y = jnp.where(y > 0, y, NEG_SLOPE * y)
    y = jax.lax.conv_general_dilated(y, w2, (1, 1), ((1, 1), (1, 1)),
                                     dimension_numbers=dn) + b2.reshape(1, -1, 1, 1)
    return jax.nn.sigmoid(y)


if __name__ == "__main__":
    # module defaults: kernel_size=3, in_channels=32 -> mid channels = 8, out channels = 1
    N, C, H, W = 2, 32, 16, 16
    Cm = C // 4

    key = jax.random.PRNGKey(0)
    kx, kw1, kb1, kw2, kb2 = jax.random.split(key, 5)
    x = jax.random.normal(kx, (N, C, H, W), dtype=jnp.float32)
    w1 = 0.1 * jax.random.normal(kw1, (Cm, C, K, K), dtype=jnp.float32)
    b1 = 0.1 * jax.random.normal(kb1, (Cm,), dtype=jnp.float32)
    w2 = 0.1 * jax.random.normal(kw2, (1, Cm, K, K), dtype=jnp.float32)
    b2 = 0.1 * jax.random.normal(kb2, (1,), dtype=jnp.float32)

    out = jax.block_until_ready(spatial_attention1(x, w1, b1, w2, b2))
    ref = jax.block_until_ready(ref_forward(x, w1, b1, w2, b2))

    assert out.shape == (N, 1, H, W), out.shape
    # bf16 matmul inputs vs full-f32 reference -> loosened tolerance.
    err = float(jnp.max(jnp.abs(out - ref)))
    assert err < 2e-2, err

    print("KERNEL_OK")
</pallas_src>

<mosaic_0001>
module attributes {stable_mosaic.version = 11 : i64} {
  func.func @_sa_kernel(%arg0: i32, %arg1: memref<2x32x400xbf16, #tpu.memory_space<vmem>>, %arg2: memref<1x362xf32, #tpu.memory_space<vmem>>, %arg3: memref<72x32xbf16, #tpu.memory_space<vmem>>, %arg4: memref<8x1xf32, #tpu.memory_space<vmem>>, %arg5: memref<9x8xbf16, #tpu.memory_space<vmem>>, %arg6: memref<1x1xf32, #tpu.memory_space<vmem>>, %arg7: memref<2x324xf32, #tpu.memory_space<vmem>>) attributes {dimension_semantics = [#tpu.dimension_semantics<parallel>], iteration_bounds = array<i64: 1>, scalar_prefetch = 0 : i64, scratch_operands = 0 : i64, tpu.core_type = #tpu.core_type<tc>, window_params = [{transform_indices = @transform_0, window_bounds = array<i64: 2, 32, 400>}, {pipeline_mode = #tpu.pipeline_mode<synchronous>, transform_indices = @transform_1, window_bounds = array<i64: 1, 362>}, {pipeline_mode = #tpu.pipeline_mode<synchronous>, transform_indices = @transform_2, window_bounds = array<i64: 72, 32>}, {pipeline_mode = #tpu.pipeline_mode<synchronous>, transform_indices = @transform_3, window_bounds = array<i64: 8, 1>}, {pipeline_mode = #tpu.pipeline_mode<synchronous>, transform_indices = @transform_4, window_bounds = array<i64: 9, 8>}, {pipeline_mode = #tpu.pipeline_mode<synchronous>, transform_indices = @transform_5, window_bounds = array<i64: 1, 1>}, {transform_indices = @transform_6, window_bounds = array<i64: 2, 324>}]} {
    %c0 = arith.constant 0 : index
    %c0_0 = arith.constant 0 : index
    %0 = vector.load %arg2[%c0, %c0_0] : memref<1x362xf32, #tpu.memory_space<vmem>>, vector<1x362xf32>
    %c0_1 = arith.constant 0 : index
    %c0_2 = arith.constant 0 : index
    %1 = vector.load %arg3[%c0_1, %c0_2] : memref<72x32xbf16, #tpu.memory_space<vmem>>, vector<72x32xbf16>
    %c0_3 = arith.constant 0 : index
    %c0_4 = arith.constant 0 : index
    %2 = vector.load %arg5[%c0_3, %c0_4] : memref<9x8xbf16, #tpu.memory_space<vmem>>, vector<9x8xbf16>
    %c0_5 = arith.constant 0 : index
    %c0_6 = arith.constant 0 : index
    %3 = vector.load %arg4[%c0_5, %c0_6] : memref<8x1xf32, #tpu.memory_space<vmem>>, vector<8x1xf32>
    %c0_7 = arith.constant 0 : index
    %c0_8 = arith.constant 0 : index
    %4 = vector.load %arg6[%c0_7, %c0_8] : memref<1x1xf32, #tpu.memory_space<vmem>>, vector<1x1xf32>
    %c0_9 = arith.constant 0 : index
    %c0_10 = arith.constant 0 : index
    %c0_11 = arith.constant 0 : index
    %5 = vector.load %arg1[%c0_9, %c0_10, %c0_11] : memref<2x32x400xbf16, #tpu.memory_space<vmem>>, vector<1x32x400xbf16>
    %6 = vector.shape_cast %5 : vector<1x32x400xbf16> to vector<32x400xbf16>
    %cst = arith.constant dense<0.000000e+00> : vector<72x400xf32>
    %7 = tpu.matmul %1, %6, %cst {dimension_numbers = #tpu.dot_dimension_numbers<[1], [0], [0], [1], [0, 0, 1, 1], [], []>} : vector<72x32xbf16>, vector<32x400xbf16>, vector<72x400xf32> -> vector<72x400xf32>
    %8 = vector.extract_strided_slice %7 {offsets = [0, 0], sizes = [8, 362], strides = [1, 1]} : vector<72x400xf32> to vector<8x362xf32>
    %9 = vector.extract_strided_slice %7 {offsets = [8, 1], sizes = [8, 362], strides = [1, 1]} : vector<72x400xf32> to vector<8x362xf32>
    %10 = vector.extract_strided_slice %7 {offsets = [16, 2], sizes = [8, 362], strides = [1, 1]} : vector<72x400xf32> to vector<8x362xf32>
    %11 = vector.extract_strided_slice %7 {offsets = [24, 18], sizes = [8, 362], strides = [1, 1]} : vector<72x400xf32> to vector<8x362xf32>
    %12 = vector.extract_strided_slice %7 {offsets = [32, 19], sizes = [8, 362], strides = [1, 1]} : vector<72x400xf32> to vector<8x362xf32>
    %13 = vector.extract_strided_slice %7 {offsets = [40, 20], sizes = [8, 362], strides = [1, 1]} : vector<72x400xf32> to vector<8x362xf32>
    %14 = vector.extract_strided_slice %7 {offsets = [48, 36], sizes = [8, 362], strides = [1, 1]} : vector<72x400xf32> to vector<8x362xf32>
    %15 = vector.extract_strided_slice %7 {offsets = [56, 37], sizes = [8, 362], strides = [1, 1]} : vector<72x400xf32> to vector<8x362xf32>
    %16 = vector.extract_strided_slice %7 {offsets = [64, 38], sizes = [8, 362], strides = [1, 1]} : vector<72x400xf32> to vector<8x362xf32>
    %17 = arith.addf %8, %9 : vector<8x362xf32>
    %18 = arith.addf %10, %11 : vector<8x362xf32>
    %19 = arith.addf %12, %13 : vector<8x362xf32>
    %20 = arith.addf %14, %15 : vector<8x362xf32>
    %21 = arith.addf %17, %18 : vector<8x362xf32>
    %22 = arith.addf %19, %20 : vector<8x362xf32>
    %23 = arith.addf %21, %22 : vector<8x362xf32>
    %24 = arith.addf %23, %16 : vector<8x362xf32>
    %25 = vector.broadcast %3 : vector<8x1xf32> to vector<8x362xf32>
    %26 = arith.addf %24, %25 : vector<8x362xf32>
    %cst_12 = arith.constant 0.000000e+00 : f32
    %27 = vector.broadcast %cst_12 : f32 to vector<8x362xf32>
    %28 = arith.cmpf ogt, %26, %27 : vector<8x362xf32>
    %cst_13 = arith.constant 0.00999999977 : f32
    %29 = vector.broadcast %cst_13 : f32 to vector<8x362xf32>
    %30 = arith.mulf %29, %26 : vector<8x362xf32>
    %31 = arith.select %28, %26, %30 : vector<8x362xi1>, vector<8x362xf32>
    %32 = vector.broadcast %0 : vector<1x362xf32> to vector<8x362xf32>
    %33 = arith.mulf %32, %31 : vector<8x362xf32>
    %34 = arith.truncf %33 : vector<8x362xf32> to vector<8x362xbf16>
    %cst_14 = arith.constant dense<0.000000e+00> : vector<9x362xf32>
    %35 = tpu.matmul %2, %34, %cst_14 {dimension_numbers = #tpu.dot_dimension_numbers<[1], [0], [0], [1], [0, 0, 1, 1], [], []>} : vector<9x8xbf16>, vector<8x362xbf16>, vector<9x362xf32> -> vector<9x362xf32>
    %36 = vector.extract_strided_slice %35 {offsets = [0, 0], sizes = [1, 324], strides = [1, 1]} : vector<9x362xf32> to vector<1x324xf32>
    %37 = vector.extract_strided_slice %35 {offsets = [1, 1], sizes = [1, 324], strides = [1, 1]} : vector<9x362xf32> to vector<1x324xf32>
    %38 = vector.extract_strided_slice %35 {offsets = [2, 2], sizes = [1, 324], strides = [1, 1]} : vector<9x362xf32> to vector<1x324xf32>
    %39 = vector.extract_strided_slice %35 {offsets = [3, 18], sizes = [1, 324], strides = [1, 1]} : vector<9x362xf32> to vector<1x324xf32>
    %40 = vector.extract_strided_slice %35 {offsets = [4, 19], sizes = [1, 324], strides = [1, 1]} : vector<9x362xf32> to vector<1x324xf32>
    %41 = vector.extract_strided_slice %35 {offsets = [5, 20], sizes = [1, 324], strides = [1, 1]} : vector<9x362xf32> to vector<1x324xf32>
    %42 = vector.extract_strided_slice %35 {offsets = [6, 36], sizes = [1, 324], strides = [1, 1]} : vector<9x362xf32> to vector<1x324xf32>
    %43 = vector.extract_strided_slice %35 {offsets = [7, 37], sizes = [1, 324], strides = [1, 1]} : vector<9x362xf32> to vector<1x324xf32>
    %44 = vector.extract_strided_slice %35 {offsets = [8, 38], sizes = [1, 324], strides = [1, 1]} : vector<9x362xf32> to vector<1x324xf32>
    %45 = arith.addf %36, %37 : vector<1x324xf32>
    %46 = arith.addf %38, %39 : vector<1x324xf32>
    %47 = arith.addf %40, %41 : vector<1x324xf32>
    %48 = arith.addf %42, %43 : vector<1x324xf32>
    %49 = arith.addf %45, %46 : vector<1x324xf32>
    %50 = arith.addf %47, %48 : vector<1x324xf32>
    %51 = arith.addf %49, %50 : vector<1x324xf32>
    %52 = arith.addf %51, %44 : vector<1x324xf32>
    %53 = vector.broadcast %4 : vector<1x1xf32> to vector<1x324xf32>
    %54 = arith.addf %52, %53 : vector<1x324xf32>
    %55 = arith.negf %54 : vector<1x324xf32>
    %56 = math.exp %55 : vector<1x324xf32>
    %cst_15 = arith.constant 1.000000e+00 : f32
    %57 = vector.broadcast %cst_15 : f32 to vector<1x324xf32>
    %58 = arith.addf %57, %56 : vector<1x324xf32>
    %59 = arith.divf %57, %58 : vector<1x324xf32>
    %c1 = arith.constant 1 : index
    %c0_16 = arith.constant 0 : index
    %c0_17 = arith.constant 0 : index
    %60 = vector.load %arg1[%c1, %c0_16, %c0_17] : memref<2x32x400xbf16, #tpu.memory_space<vmem>>, vector<1x32x400xbf16>
    %61 = vector.shape_cast %60 : vector<1x32x400xbf16> to vector<32x400xbf16>
    %cst_18 = arith.constant dense<0.000000e+00> : vector<72x400xf32>
    %62 = tpu.matmul %1, %61, %cst_18 {dimension_numbers = #tpu.dot_dimension_numbers<[1], [0], [0], [1], [0, 0, 1, 1], [], []>} : vector<72x32xbf16>, vector<32x400xbf16>, vector<72x400xf32> -> vector<72x400xf32>
    %63 = vector.extract_strided_slice %62 {offsets = [0, 0], sizes = [8, 362], strides = [1, 1]} : vector<72x400xf32> to vector<8x362xf32>
    %64 = vector.extract_strided_slice %62 {offsets = [8, 1], sizes = [8, 362], strides = [1, 1]} : vector<72x400xf32> to vector<8x362xf32>
    %65 = vector.extract_strided_slice %62 {offsets = [16, 2], sizes = [8, 362], strides = [1, 1]} : vector<72x400xf32> to vector<8x362xf32>
    %66 = vector.extract_strided_slice %62 {offsets = [24, 18], sizes = [8, 362], strides = [1, 1]} : vector<72x400xf32> to vector<8x362xf32>
    %67 = vector.extract_strided_slice %62 {offsets = [32, 19], sizes = [8, 362], strides = [1, 1]} : vector<72x400xf32> to vector<8x362xf32>
    %68 = vector.extract_strided_slice %62 {offsets = [40, 20], sizes = [8, 362], strides = [1, 1]} : vector<72x400xf32> to vector<8x362xf32>
    %69 = vector.extract_strided_slice %62 {offsets = [48, 36], sizes = [8, 362], strides = [1, 1]} : vector<72x400xf32> to vector<8x362xf32>
    %70 = vector.extract_strided_slice %62 {offsets = [56, 37], sizes = [8, 362], strides = [1, 1]} : vector<72x400xf32> to vector<8x362xf32>
    %71 = vector.extract_strided_slice %62 {offsets = [64, 38], sizes = [8, 362], strides = [1, 1]} : vector<72x400xf32> to vector<8x362xf32>
    %72 = arith.addf %63, %64 : vector<8x362xf32>
    %73 = arith.addf %65, %66 : vector<8x362xf32>
    %74 = arith.addf %67, %68 : vector<8x362xf32>
    %75 = arith.addf %69, %70 : vector<8x362xf32>
    %76 = arith.addf %72, %73 : vector<8x362xf32>
    %77 = arith.addf %74, %75 : vector<8x362xf32>
    %78 = arith.addf %76, %77 : vector<8x362xf32>
    %79 = arith.addf %78, %71 : vector<8x362xf32>
    %80 = vector.broadcast %3 : vector<8x1xf32> to vector<8x362xf32>
    %81 = arith.addf %79, %80 : vector<8x362xf32>
    %cst_19 = arith.constant 0.000000e+00 : f32
    %82 = vector.broadcast %cst_19 : f32 to vector<8x362xf32>
    %83 = arith.cmpf ogt, %81, %82 : vector<8x362xf32>
    %cst_20 = arith.constant 0.00999999977 : f32
    %84 = vector.broadcast %cst_20 : f32 to vector<8x362xf32>
    %85 = arith.mulf %84, %81 : vector<8x362xf32>
    %86 = arith.select %83, %81, %85 : vector<8x362xi1>, vector<8x362xf32>
    %87 = vector.broadcast %0 : vector<1x362xf32> to vector<8x362xf32>
    %88 = arith.mulf %87, %86 : vector<8x362xf32>
    %89 = arith.truncf %88 : vector<8x362xf32> to vector<8x362xbf16>
    %cst_21 = arith.constant dense<0.000000e+00> : vector<9x362xf32>
    %90 = tpu.matmul %2, %89, %cst_21 {dimension_numbers = #tpu.dot_dimension_numbers<[1], [0], [0], [1], [0, 0, 1, 1], [], []>} : vector<9x8xbf16>, vector<8x362xbf16>, vector<9x362xf32> -> vector<9x362xf32>
    %91 = vector.extract_strided_slice %90 {offsets = [0, 0], sizes = [1, 324], strides = [1, 1]} : vector<9x362xf32> to vector<1x324xf32>
    %92 = vector.extract_strided_slice %90 {offsets = [1, 1], sizes = [1, 324], strides = [1, 1]} : vector<9x362xf32> to vector<1x324xf32>
    %93 = vector.extract_strided_slice %90 {offsets = [2, 2], sizes = [1, 324], strides = [1, 1]} : vector<9x362xf32> to vector<1x324xf32>
    %94 = vector.extract_strided_slice %90 {offsets = [3, 18], sizes = [1, 324], strides = [1, 1]} : vector<9x362xf32> to vector<1x324xf32>
    %95 = vector.extract_strided_slice %90 {offsets = [4, 19], sizes = [1, 324], strides = [1, 1]} : vector<9x362xf32> to vector<1x324xf32>
    %96 = vector.extract_strided_slice %90 {offsets = [5, 20], sizes = [1, 324], strides = [1, 1]} : vector<9x362xf32> to vector<1x324xf32>
    %97 = vector.extract_strided_slice %90 {offsets = [6, 36], sizes = [1, 324], strides = [1, 1]} : vector<9x362xf32> to vector<1x324xf32>
    %98 = vector.extract_strided_slice %90 {offsets = [7, 37], sizes = [1, 324], strides = [1, 1]} : vector<9x362xf32> to vector<1x324xf32>
    %99 = vector.extract_strided_slice %90 {offsets = [8, 38], sizes = [1, 324], strides = [1, 1]} : vector<9x362xf32> to vector<1x324xf32>
    %100 = arith.addf %91, %92 : vector<1x324xf32>
    %101 = arith.addf %93, %94 : vector<1x324xf32>
    %102 = arith.addf %95, %96 : vector<1x324xf32>
    %103 = arith.addf %97, %98 : vector<1x324xf32>
    %104 = arith.addf %100, %101 : vector<1x324xf32>
    %105 = arith.addf %102, %103 : vector<1x324xf32>
    %106 = arith.addf %104, %105 : vector<1x324xf32>
    %107 = arith.addf %106, %99 : vector<1x324xf32>
    %108 = vector.broadcast %4 : vector<1x1xf32> to vector<1x324xf32>
    %109 = arith.addf %107, %108 : vector<1x324xf32>
    %110 = arith.negf %109 : vector<1x324xf32>
    %111 = math.exp %110 : vector<1x324xf32>
    %cst_22 = arith.constant 1.000000e+00 : f32
    %112 = vector.broadcast %cst_22 : f32 to vector<1x324xf32>
    %113 = arith.addf %112, %111 : vector<1x324xf32>
    %114 = arith.divf %112, %113 : vector<1x324xf32>
    %115 = tpu.concatenate %59, %114 in 0 : vector<1x324xf32>, vector<1x324xf32> -> vector<2x324xf32>
    %c0_23 = arith.constant 0 : index
    %c0_24 = arith.constant 0 : index
    %116 = vector.load %arg7[%c0_23, %c0_24] : memref<2x324xf32, #tpu.memory_space<vmem>>, vector<2x324xf32>
    tpu.vector_store %arg7[%c0_23, %c0_24], %115 {strides = array<i32>} : memref<2x324xf32, #tpu.memory_space<vmem>>, vector<2x324xf32>,
    return
  }
  func.func @transform_0(%arg0: i32) -> (i32, i32, i32) {
    %c0_i32 = arith.constant 0 : i32
    %c0_i32_0 = arith.constant 0 : i32
    %c0_i32_1 = arith.constant 0 : i32
    return %arg0, %c0_i32, %c0_i32_0 : i32, i32, i32
  }
  func.func @transform_1(%arg0: i32) -> (i32, i32) {
    %c0_i32 = arith.constant 0 : i32
    %c0_i32_0 = arith.constant 0 : i32
    %c0_i32_1 = arith.constant 0 : i32
    return %c0_i32, %c0_i32_0 : i32, i32
  }
  func.func @transform_2(%arg0: i32) -> (i32, i32) {
    %c0_i32 = arith.constant 0 : i32
    %c0_i32_0 = arith.constant 0 : i32
    %c0_i32_1 = arith.constant 0 : i32
    return %c0_i32, %c0_i32_0 : i32, i32
  }
  func.func @transform_3(%arg0: i32) -> (i32, i32) {
    %c0_i32 = arith.constant 0 : i32
    %c0_i32_0 = arith.constant 0 : i32
    %c0_i32_1 = arith.constant 0 : i32
    return %c0_i32, %c0_i32_0 : i32, i32
  }
  func.func @transform_4(%arg0: i32) -> (i32, i32) {
    %c0_i32 = arith.constant 0 : i32
    %c0_i32_0 = arith.constant 0 : i32
    %c0_i32_1 = arith.constant 0 : i32
    return %c0_i32, %c0_i32_0 : i32, i32
  }
  func.func @transform_5(%arg0: i32) -> (i32, i32) {
    %c0_i32 = arith.constant 0 : i32
    %c0_i32_0 = arith.constant 0 : i32
    %c0_i32_1 = arith.constant 0 : i32
    return %c0_i32, %c0_i32_0 : i32, i32
  }
  func.func @transform_6(%arg0: i32) -> (i32, i32) {
    %c0_i32 = arith.constant 0 : i32
    %c0_i32_0 = arith.constant 0 : i32
    return %arg0, %c0_i32 : i32, i32
  }
}

</mosaic_0001>

<bundles_post_ra>
// kernel: spatial_attention1.1
= control target key start
LH: loop header
LB: loop body
LE: loop exit
PB: predicated region body
PF: predicated region fallthrough
CT: control target
= control target key end

     0   :  { %v1506_v1 = vmov 0   ;;  %vm111_vm0 = vcmask 261120   ;;  %s1508_s23 = smov 112   ;;  %vm292_vm1 = vcmask 1039360   ;;  %s1509_s24 = smov 111   ;;  %vm310_vm2 = vcmask 916480   ;;  %s2061_s0 = inlined_call_operand.vmem [shape: bf16[2,32,400], index: 0, kind: input, shape index: {}]   ;;  %s2062_s2 = inlined_call_operand.vmem [shape: bf16[72,32], index: 2, kind: input, shape index: {}]   ;;  %s2063_s3 = inlined_call_operand.vmem [shape: f32[8,1], index: 3, kind: input, shape index: {}]   ;;  %s2064_s4 = inlined_call_operand.vmem [shape: bf16[9,8], index: 4, kind: input, shape index: {}]   ;;  %s2065_s1 = inlined_call_operand.vmem [shape: f32[1,362], index: 1, kind: input, shape index: {}]   ;;  %s2066_s5 = inlined_call_operand.<no memory space> [shape: f32[1,1], index: 5, kind: input, shape index: {}]   ;;  %s2067_s6 = inlined_call_operand.vmem [shape: f32[2,324], index: 6, kind: output, shape index: {}]  }
   0x1   :  { %v1452_v0 = vld [vmem:[%s2061_s0 + $0x4] ss:$16 sps:$4 sm:$0xff]   ;;  %159 = vmatprep.mubr.bf16.mxu0 %v1506_v1  ;;  %240 = vmatprep.mubr.bf16.mxu1 %v1506_v1  ;;  %v1454_v2 = vld [vmem:[%s2061_s0 + $0xc] ss:$16 sps:$4 sm:$0xff]   ;;  %v1456_v3 = vld [vmem:[%s2061_s0] ss:$16 sps:$4 sm:$0xff]  }
   0x2   :  { %1451 = vset.pattern.permute.xlu0 %v1506_v1  ;;  %127 = vmatprep.subr.bf16.mxu0 %v1452_v0  ;;  %v1457_v4 = vld [vmem:[%s2061_s0 + $0x8] ss:$16 sps:$4 sm:$0xff]   ;;  %v1458_v5 = vld [vmem:[%s2061_s0 + $0x24] ss:$16 sps:$4 sm:$0xff]   ;;  %v1460_v6 = vld [vmem:[%s2061_s0 + $0x2c] ss:$16 sps:$4 sm:$0xff]  }
   0x3   :  { %208 = vmatprep.subr.bf16.mxu1 %v1454_v2  ;;  %128 = vmatpush1.bf16.msra.mxu0 %v1456_v3  ;;  %v1462_v7 = vld [vmem:[%s2061_s0 + $0x20] ss:$16 sps:$4 sm:$0xff]   ;;  %v1463_v8 = vld [vmem:[%s2061_s0 + $0x28] ss:$16 sps:$4 sm:$0xff]   ;;  %s1510_s25 = smov 126   ;;  %s1511_s28 = smov 90  }
   0x4   :  { %209 = vmatpush1.bf16.msra.mxu1 %v1457_v4  ;;  %129 = vmatprep.subr.bf16.mxu0 %v1458_v5  ;;  %v1581_v9 = vld [vmem:[%s2062_s2] sm:$0xff]   ;;  %v1592_v10 = vld [vmem:[%s2062_s2 + $0x8] sm:$0xff]   ;;  %v1603_v11 = vld [vmem:[%s2062_s2 + $0x10] sm:$0xff]   ;;  %vm389_vm3 = vcmask 908288   ;;  %vm1514_vm4 = vmmov 0   ;;  %vm368_vm5 = vcmask 1031168  }
   0x5   :  { %210 = vmatprep.subr.bf16.mxu1 %v1460_v6  ;;  %v1614_v12 = vld [vmem:[%s2062_s2 + $0x18] sm:$0xff]   ;;  %v1625_v13 = vld [vmem:[%s2062_s2 + $0x20] ss:$0 sps:$4 sm:$0xff]   ;;  %s1507_s2 = smov 127   ;;  %vm408_vm6 = vcmask 891904   ;;  %vm429_vm7 = vcmask 736256  }
   0x6   :  { %vm487_vm11 = vcmask 1043456   ;;  %vm483_vm12 = vcmask 64512  }
   0x7   :  { %130 = vmatpush1.bf16.msra.mxu0 %v1462_v7 }
   0x8   :  { %211 = vmatpush1.bf16.msra.mxu1 %v1463_v8 }
   0xa   :  { %1376 = vmatmul.mubr.msk.bf16.vlgmr.msra.gmra.mrb[0].mxu0 %vm111_vm0, %v1581_v9 }
   0xb   :  { %1381 = vmatmul.mubr.msk.bf16.vlgmr.msra.gmra.mrb[0].mxu1 %vm111_vm0, %v1581_v9  ;;  %169 = vmatprep.mubr.bf16.mxu0 %v1506_v1 }
   0xc   :  { %248 = vmatprep.mubr.bf16.mxu1 %v1506_v1 }
  0x12   :  { %1377 = vmatmul.mubr.msk.bf16.gmra.mrb[4].mxu0 %vm111_vm0, %v1592_v10 }
  0x13   :  { %1382 = vmatmul.mubr.msk.bf16.gmra.mrb[4].mxu1 %vm111_vm0, %v1592_v10  ;;  %179 = vmatprep.mubr.bf16.mxu0 %v1506_v1 }
  0x14   :  { %256 = vmatprep.mubr.bf16.mxu1 %v1506_v1 }
  0x1a   :  { %1378 = vmatmul.mubr.msk.bf16.gmra.mrb[8].mxu0 %vm111_vm0, %v1603_v11 }
  0x1b   :  { %1383 = vmatmul.mubr.msk.bf16.gmra.mrb[8].mxu1 %vm111_vm0, %v1603_v11  ;;  %189 = vmatprep.mubr.bf16.mxu0 %v1506_v1 }
  0x1c   :  { %264 = vmatprep.mubr.bf16.mxu1 %v1506_v1 }
  0x22   :  { %1379 = vmatmul.mubr.msk.bf16.gmra.mrb[12].mxu0 %vm111_vm0, %v1614_v12 }
  0x23   :  { %1384 = vmatmul.mubr.msk.bf16.gmra.mrb[12].mxu1 %vm111_vm0, %v1614_v12  ;;  %199 = vmatprep.mubr.bf16.mxu0 %v1506_v1 }
  0x24   :  { %274 = vmatprep.mubr.bf16.mxu1 %v1506_v1 }
  0x2a   :  { %1380 = vmatmul.mubr.msk.bf16.gmra.mrb[16].mxu0 %vm111_vm0, %v1625_v13 }
  0x2b   :  { %1385 = vmatmul.mubr.msk.bf16.gmra.mrb[16].mxu1 %vm111_vm0, %v1625_v13  ;;  %529 = vmatprep.mubr.bf16.mxu0 %v1506_v1 }
  0xdd   :  { %v1632_v14 = vpop.f32.mrb[0].mxu0 }
  0xde   :  { %v1634_v15 = vpop.f32.mrb[0].mxu1  ;;  %v1636_v16 = vpop.f32.mrb[1].mxu0 }
  0xdf   :  { %v244_v17 = vpop.f32.mrb[1].mxu1  ;;  %v1638_v18 = vpop.f32.mrb[2].mxu0 }
  0xe0   :  { %v1640_v19 = vpop.f32.mrb[2].mxu1  ;;  %v1642_v20 = vpop.f32.mrb[3].mxu0 }
  0xe1   :  { %v247_v21 = vpop.f32.mrb[3].mxu1 }
  0xe5   :  { %v1644_v22 = vpop.f32.mrb[4].mxu0 }
  0xe6   :  { %v1646_v23 = vpop.f32.mrb[4].mxu1  ;;  %v1648_v24 = vpop.f32.mrb[5].mxu0 }
  0xe7   :  { %v252_v25 = vpop.f32.mrb[5].mxu1  ;;  %v175_v26 = vpop.f32.mrb[6].mxu0 }
  0xe8   :  { %v253_v27 = vpop.f32.mrb[6].mxu1  ;;  %v177_v28 = vpop.f32.mrb[7].mxu0 }
  0xe9   :  { %v255_v29 = vpop.f32.mrb[7].mxu1 }
  0xed   :  { %v1650_v30 = vpop.f32.mrb[8].mxu0 }
  0xee   :  { %v1652_v31 = vpop.f32.mrb[8].mxu1  ;;  %v1654_v32 = vpop.f32.mrb[9].mxu0 }
  0xef   :  { %v260_v33 = vpop.f32.mrb[9].mxu1  ;;  %v185_v34 = vpop.f32.mrb[10].mxu0 }
  0xf0   :  { %v261_v35 = vpop.f32.mrb[10].mxu1  ;;  %v187_v36 = vpop.f32.mrb[11].mxu0 }
  0xf1   :  { %v263_v37 = vpop.f32.mrb[11].mxu1 }
  0xf5   :  { %v191_v38 = vpop.f32.mrb[12].mxu0 }
  0xf6   :  { %v266_v39 = vpop.f32.mrb[12].mxu1  ;;  %v193_v40 = vpop.f32.mrb[13].mxu0 }
  0xf7   :  { %v268_v41 = vpop.f32.mrb[13].mxu1  ;;  %v195_v42 = vpop.f32.mrb[14].mxu0 }
  0xf8   :  { %v270_v43 = vpop.f32.mrb[14].mxu1  ;;  %340 = vrot.lane.b32.xlu0 %v195_v42, %s1507_s2  ;;  %v197_v44 = vpop.f32.mrb[15].mxu0 }
  0xf9   :  { %344 = vrot.lane.b32.xlu1 %v270_v43, %s1507_s2  ;;  %v272_v45 = vpop.f32.mrb[15].mxu1 }
  0xfc   :  { %342 = vrot.lane.b32.xlu0 %v197_v44, %s1507_s2 }
  0xfd   :  { %346 = vrot.lane.b32.xlu1 %v272_v45, %s1507_s2  ;;  %v201_v46 = vpop.f32.mrb[16].mxu0 }
  0xfe   :  { %v203_v47 = vpop.f32.mrb[17].mxu0  ;;  %v1666_v52 = vpop.f32.mrb[16].mxu1 }
  0xff   :  { %v205_v48 = vpop.f32.mrb[18].mxu0  ;;  %v1668_v53 = vpop.f32.mrb[17].mxu1 }
 0x100   :  { %304 = vrot.lane.b32.xlu0 %v175_v26, %s1508_s23  ;;  %v206_v49 = vpop.f32.mrb[19].mxu0  ;;  %v280_v58 = vpop.f32.mrb[18].mxu1 }
 0x101   :  { %306 = vrot.lane.b32.xlu1 %v177_v28, %s1508_s23  ;;  %v281_v61 = vpop.f32.mrb[19].mxu1 }
 0x104   :  { %308 = vrot.lane.b32.xlu0 %v253_v27, %s1508_s23 }
 0x105   :  { %322 = vrot.lane.b32.xlu1 %v185_v34, %s1507_s2 }
 0x108   :  { %324 = vrot.lane.b32.xlu0 %v187_v36, %s1507_s2 }
 0x109   :  { %326 = vrot.lane.b32.xlu1 %v261_v35, %s1507_s2 }
 0x16a   :  { %v341_v51 = vpop.permute.xlu0 %340 }
 0x16b   :  { %v345_v50 = vpop.permute.xlu1 %344 }
 0x16e   :  { %v343_v55 = vpop.permute.xlu0 %342 }
 0x16f   :  { %v347_v54 = vpop.permute.xlu1 %346  ;;  %v348_v56 = vsel %vm292_vm1, %v341_v51, %v343_v55  ;;  %v349_v57 = vsel %vm292_vm1, %v343_v55, %v345_v50 }
 0x170   :  { %v355_v59 = vadd.f32 %v348_v56, %v191_v38  ;;  %v356_v60 = vadd.f32 %v349_v57, %v193_v40  ;;  %v350_v62 = vsel %vm292_vm1, %v345_v50, %v347_v54  ;;  %v358_v0 = vadd.f32 %v347_v54, %v268_v41 }
 0x171   :  { %v357_v63 = vadd.f32 %v350_v62, %v266_v39  ;;  %v1513_v39 = vmov 0.0  }
 0x172   :  { %383 = vrot.lane.b32.xlu1 %v356_v60, %s1509_s24  ;;  %381 = vrot.lane.b32.xlu0 %v355_v59, %s1509_s24  ;;  %v305_v2 = vpop.permute.xlu0 %304 }
 0x173   :  { %v307_v3 = vpop.permute.xlu1 %306  ;;  %1429 = vmatprep.subr.bf16.mxu1 %v1513_v39  ;;  %1431 = vmatprep.mubr.msk.bf16.mxu1 %vm1514_vm4, %v1513_v39 }
 0x174   :  { %v311_v4 = vsel %vm310_vm2, %v305_v2, %v307_v3 }
 0x175   :  { %v316_v6 = vadd.f32 %v311_v4, %v1644_v22 }
 0x176   :  { %387 = vrot.lane.b32.xlu1 %v358_v0, %s1509_s24  ;;  %385 = vrot.lane.b32.xlu0 %v357_v63, %s1509_s24  ;;  %v309_v5 = vpop.permute.xlu0 %308 }
 0x177   :  { %v312_v7 = vsel %vm310_vm2, %v307_v3, %v309_v5  ;;  %v318_v17 = vadd.f32 %v309_v5, %v1646_v23 }
 0x178   :  { %v317_v8 = vadd.f32 %v312_v7, %v1648_v24 }
 0x17a   :  { %288 = vrot.lane.b32.xlu1 %v1642_v20, %s1507_s2  ;;  %286 = vrot.lane.b32.xlu0 %v1638_v18, %s1507_s2  ;;  %v38_v18 = vld [vmem:[%s2063_s3] sm:$0xff]  ;;  %v325_v20 = vpop.permute.xlu0 %324  ;;  %s1512_s3 = smov 109  }
 0x17e   :  { %290 = vrot.lane.b32.xlu0 %v1640_v19, %s1507_s2  ;;  %362 = vrot.lane.b32.xlu1 %v316_v6, %s1510_s25  ;;  %v323_v19 = vpop.permute.xlu1 %322  ;;  %v26_v6 = vld [vmem:[%s2065_s1] sm:$0x7] }
 0x17f   :  { %v328_v22 = vsel %vm292_vm1, %v323_v19, %v325_v20 }
 0x180   :  { %v333_v23 = vadd.f32 %v328_v22, %v1650_v30 }
 0x182   :  { %366 = vrot.lane.b32.xlu1 %v318_v17, %s1510_s25  ;;  %364 = vrot.lane.b32.xlu0 %v317_v8, %s1510_s25  ;;  %v327_v21 = vpop.permute.xlu1 %326 }
 0x183   :  { %v329_v26 = vsel %vm292_vm1, %v325_v20, %v327_v21  ;;  %v335_v29 = vadd.f32 %v327_v21, %v1652_v31 }
 0x184   :  { %v334_v33 = vadd.f32 %v329_v26, %v1654_v32 }
 0x186   :  { %441 = vperm.xlu0 %1451, %v38_v18   ;;  %421 = vrot.lane.b32.xlu1 %v201_v46, %s1511_s28 }
 0x18a   :  { %423 = vrot.lane.b32.xlu0 %v203_v47, %s1511_s28  ;;  %v457_v47 = vlaneseq }
 0x18c   :  { %v1721_v54 = vshrl.u32 %v457_v47, 7  ;;  %v1473_v47 = vld [vmem:[%s2061_s0 + $0x48] ss:$16 sps:$4 sm:$0xff]  }
 0x18e   :  { %v459_v2 = vsub.s32 0, %v1721_v54  ;;  %v463_v17 = vsub.s32 1, %v1721_v54  ;;  %v467_v18 = vsub.s32 2, %v1721_v54 }
 0x190   :  { %v1739_v22 = vrot.slane %v26_v6, %v459_v2  ;;  %v1743_v26 = vrot.slane %v26_v6, %v463_v17 }
 0x1e4   :  { %v384_v24 = vpop.permute.xlu1 %383  ;;  %v382_v25 = vpop.permute.xlu0 %381 }
 0x1e5   :  { %v390_v27 = vsel %vm389_vm3, %v382_v25, %v384_v24 }
 0x1e6   :  { %v396_v28 = vadd.f32 %v390_v27, %v333_v23  ;;  %v1745_v27 = vrot.slane %v26_v6, %v467_v18 }
 0x1e8   :  { %v388_v34 = vpop.permute.xlu1 %387  ;;  %v386_v35 = vpop.permute.xlu0 %385  ;;  %402 = vrot.lane.b32.xlu1 %v396_v28, %s1512_s3 }
 0x1e9   :  { %v391_v36 = vsel %vm389_vm3, %v384_v24, %v386_v35  ;;  %v392_v30 = vsel %vm389_vm3, %v386_v35, %v388_v34 }
 0x1ea   :  { %v397_v37 = vadd.f32 %v391_v36, %v334_v33  ;;  %v398_v38 = vadd.f32 %v392_v30, %v335_v29 }
 0x1ec   :  { %404 = vrot.lane.b32.xlu1 %v397_v37, %s1512_s3  ;;  %406 = vrot.lane.b32.xlu0 %v398_v38, %s1512_s3  ;;  %v289_v31 = vpop.permute.xlu1 %288  ;;  %v287_v32 = vpop.permute.xlu0 %286 }
 0x1ed   :  { %v293_v46 = vsel %vm292_vm1, %v287_v32, %v289_v31 }
 0x1f0   :  { %425 = vrot.lane.b32.xlu1 %v1666_v52, %s1511_s28  ;;  %427 = vrot.lane.b32.xlu0 %v1668_v53, %s1511_s28  ;;  %v363_v40 = vpop.permute.xlu1 %362  ;;  %v291_v41 = vpop.permute.xlu0 %290  ;;  %v298_v52 = vadd.f32 %v293_v46, %v1632_v14  ;;  %v1470_v46 = vld [vmem:[%s2061_s0 + $0x40] ss:$16 sps:$4 sm:$0xff]  }
 0x1f1   :  { %v294_v50 = vsel %vm292_vm1, %v289_v31, %v291_v41  ;;  %v300_v56 = vadd.f32 %v291_v41, %v1634_v15  ;;  %v1475_v41 = vld [vmem:[%s2061_s0 + $0x4c] ss:$16 sps:$4 sm:$0xff]  }
 0x1f2   :  { %v299_v55 = vadd.f32 %v294_v50, %v1636_v16  ;;  %v1476_v50 = vld [vmem:[%s2061_s0 + $0x60] ss:$16 sps:$4 sm:$0xff]  }
 0x1f4   :  { %v367_v42 = vpop.permute.xlu1 %366  ;;  %v365_v43 = vpop.permute.xlu0 %364 }
 0x1f5   :  { %v369_v51 = vsel %vm368_vm5, %v363_v40, %v365_v43  ;;  %v370_v53 = vsel %vm368_vm5, %v365_v43, %v367_v42  ;;  %v376_v62 = vadd.f32 %v367_v42, %v300_v56  ;;  %v1472_v40 = vld [vmem:[%s2061_s0 + $0x44] ss:$16 sps:$4 sm:$0xff]  }
 0x1f6   :  { %v374_v57 = vadd.f32 %v369_v51, %v298_v52  ;;  %v375_v63 = vadd.f32 %v370_v53, %v299_v55  ;;  %v1479_v51 = vld [vmem:[%s2061_s0 + $0x68] ss:$16 sps:$4 sm:$0xff]  }
 0x1f8   :  { %v422_v45 = vpop.permute.xlu1 %421 }
 0x205   :  { %v1714_v44 = vpop.permute.xlu0 %441 }
 0x209   :  { %v424_v48 = vpop.permute.xlu0 %423 }
 0x20a   :  { %v430_v0 = vsel %vm429_vm7, %v422_v45, %v424_v48  ;;  %v1762_v45 = vld [vmem:[%s2064_s4] sm:$0x1f]  }
 0x25a   :  { %v403_v49 = vpop.permute.xlu1 %402 }
 0x25e   :  { %v405_v58 = vpop.permute.xlu1 %404  ;;  %v407_v59 = vpop.permute.xlu0 %406 }
 0x25f   :  { %v409_v60 = vsel %vm408_vm6, %v403_v49, %v405_v58  ;;  %v410_v61 = vsel %vm408_vm6, %v405_v58, %v407_v59  ;;  %v416_v16 = vadd.f32 %v407_v59, %v376_v62  ;;  %v1481_v49 = vld [vmem:[%s2061_s0 + $0x6c] ss:$16 sps:$4 sm:$0xff]  }
 0x260   :  { %v414_v14 = vadd.f32 %v409_v60, %v374_v57  ;;  %v415_v4 = vadd.f32 %v410_v61, %v375_v63 }
 0x262   :  { %v436_v3 = vadd.f32 %v430_v0, %v414_v14  ;;  %v426_v5 = vpop.permute.xlu1 %425  ;;  %v428_v15 = vpop.permute.xlu0 %427 }
 0x263   :  { %v431_v7 = vsel %vm429_vm7, %v424_v48, %v426_v5  ;;  %v432_v8 = vsel %vm429_vm7, %v426_v5, %v428_v15  ;;  %v1478_v48 = vld [vmem:[%s2061_s0 + $0x64] ss:$16 sps:$4 sm:$0xff]  }
 0x264   :  { %v444_v19 = vadd.f32 %v1714_v44, %v436_v3  ;;  %v437_v20 = vadd.f32 %v431_v7, %v415_v4  ;;  %v438_v21 = vadd.f32 %v432_v8, %v416_v16 }
 0x266   :  { %v450_v23 = vmul.f32 0.01, %v444_v19  ;;  %v445_v24 = vadd.f32 %v1714_v44, %v437_v20  ;;  %v446_v25 = vadd.f32 %v1714_v44, %v438_v21  ;;  %vm447_vm8 = vcmp.gt.f32.partialorder %v444_v19, 0.0 }
 0x268   :  { %vm448_vm9 = vcmp.gt.f32.partialorder %v445_v24, 0.0  ;;  %v451_v28 = vmul.f32 0.01, %v445_v24  ;;  %v452_v29 = vmul.f32 0.01, %v446_v25  ;;  %v453_v33 = vsel %vm447_vm8, %v444_v19, %v450_v23 }
 0x269   :  { %v472_v34 = vmul.f32 %v1739_v22, %v453_v33  ;;  %vm449_vm10 = vcmp.gt.f32.partialorder %v446_v25, 0.0 }
 0x26a   :  { %v454_v35 = vsel %vm448_vm9, %v445_v24, %v451_v28  ;;  %v455_v36 = vsel %vm449_vm10, %v446_v25, %v452_v29 }
 0x26b   :  { %v473_v30 = vmul.f32 %v1743_v26, %v454_v35  ;;  %v475_v37 = vpack.c.bf16 %v472_v34, %v472_v34  ;;  %v474_v38 = vmul.f32 %v1745_v27, %v455_v36 }
 0x26d   :  { %v476_v31 = vpack.c.bf16 %v473_v30, %v473_v30  ;;  %v477_v32 = vpack.c.bf16 %v474_v38, %v474_v38  ;;  %v489_v42 = vsel %vm487_vm11, %v475_v37, 0 }
 0x26f   :  { %1387 = vmatprep.subr.msk.bf16.mxu0 %vm487_vm11, %v476_v31  ;;  %v495_v43 = vsel %vm487_vm11, %v477_v32, 0 }
 0x270   :  { %498 = vmatpush1.bf16.msra.mxu0 %v489_v42  ;;  %1430 = vmatpush3.bf16.msra.mxu1 %v495_v43 }
 0x271   :  { %771 = vmatprep.subr.bf16.mxu0 %v1472_v40  ;;  %852 = vmatprep.subr.bf16.mxu1 %v1475_v41 }
 0x273   :  { %1388 = vmatmul.mubr.msk.bf16.vlgmr.msra.gmra.mrb[20].mxu0 %vm483_vm12, %v1762_v45  ;;  %1432 = vmatmul.mubr.msk.bf16.vlgmr.msra.gmra.mrb[20].mxu1 %vm483_vm12, %v1762_v45 }
 0x274   :  { %772 = vmatpush1.bf16.msra.mxu0 %v1470_v46  ;;  %853 = vmatpush1.bf16.msra.mxu1 %v1473_v47 }
 0x275   :  { %773 = vmatprep.subr.bf16.mxu0 %v1478_v48  ;;  %854 = vmatprep.subr.bf16.mxu1 %v1481_v49 }
 0x276   :  { %803 = vmatprep.mubr.bf16.mxu0 %v1506_v1  ;;  %884 = vmatprep.mubr.bf16.mxu1 %v1506_v1 }
 0x278   :  { %774 = vmatpush1.bf16.msra.mxu0 %v1476_v50  ;;  %855 = vmatpush1.bf16.msra.mxu1 %v1479_v51 }
 0x279   :  { %1435 = vmatprep.subr.bf16.mxu1 %v1513_v39 }
 0x27b   :  { %1409 = vmatmul.mubr.msk.bf16.vlgmr.msra.gmra.mrb[24].mxu0 %vm111_vm0, %v1581_v9  ;;  %1414 = vmatmul.mubr.msk.bf16.vlgmr.msra.gmra.mrb[24].mxu1 %vm111_vm0, %v1581_v9 }
 0x27c   :  { %813 = vmatprep.mubr.bf16.mxu0 %v1506_v1  ;;  %892 = vmatprep.mubr.bf16.mxu1 %v1506_v1 }
 0x283   :  { %1410 = vmatmul.mubr.msk.bf16.gmra.mrb[28].mxu0 %vm111_vm0, %v1592_v10  ;;  %1415 = vmatmul.mubr.msk.bf16.gmra.mrb[28].mxu1 %vm111_vm0, %v1592_v10 }
 0x284   :  { %823 = vmatprep.mubr.bf16.mxu0 %v1506_v1  ;;  %900 = vmatprep.mubr.bf16.mxu1 %v1506_v1 }
 0x28b   :  { %1411 = vmatmul.mubr.msk.bf16.gmra.mrb[32].mxu0 %vm111_vm0, %v1603_v11  ;;  %1416 = vmatmul.mubr.msk.bf16.gmra.mrb[32].mxu1 %vm111_vm0, %v1603_v11 }
 0x28c   :  { %833 = vmatprep.mubr.bf16.mxu0 %v1506_v1  ;;  %908 = vmatprep.mubr.bf16.mxu1 %v1506_v1 }
 0x293   :  { %1412 = vmatmul.mubr.msk.bf16.gmra.mrb[36].mxu0 %vm111_vm0, %v1614_v12  ;;  %1417 = vmatmul.mubr.msk.bf16.gmra.mrb[36].mxu1 %vm111_vm0, %v1614_v12 }
 0x294   :  { %843 = vmatprep.mubr.bf16.mxu0 %v1506_v1  ;;  %918 = vmatprep.mubr.bf16.mxu1 %v1506_v1 }
 0x29b   :  { %1413 = vmatmul.mubr.msk.bf16.gmra.mrb[40].mxu0 %vm111_vm0, %v1625_v13  ;;  %1418 = vmatmul.mubr.msk.bf16.gmra.mrb[40].mxu1 %vm111_vm0, %v1625_v13  ;;  %vm1329_vm0 = vcmask 1040384  }
 0x29c   :  { %1136 = vmatprep.mubr.bf16.mxu0 %v1506_v1  ;;  %1437 = vmatprep.mubr.msk.bf16.mxu1 %vm1514_vm4, %v1513_v39  ;;  %vm1356_vm4 = vcmask 553988  }
 0x346   :  { %v1820_v9 = vpop.f32.mrb[20].mxu0  ;;  %v1822_v10 = vpop.f32.mrb[20].mxu1 }
 0x347   :  { %v1824_v11 = vpop.f32.mrb[21].mxu0  ;;  %v1433_v12 = vpop.f32.mrb[21].mxu1 }
 0x348   :  { %v1826_v52 = vpop.f32.mrb[22].mxu0  ;;  %v1828_v53 = vpop.f32.mrb[22].mxu1 }
 0x349   :  { %v1830_v55 = vpop.f32.mrb[23].mxu0  ;;  %v1434_v56 = vpop.f32.mrb[23].mxu1 }
 0x34e   :  { %v1832_v13 = vpop.f32.mrb[24].mxu0  ;;  %v1834_v1 = vpop.f32.mrb[24].mxu1 }
 0x34f   :  { %v1836_v57 = vpop.f32.mrb[25].mxu0  ;;  %v888_v39 = vpop.f32.mrb[25].mxu1 }
 0x350   :  { %v1838_v58 = vpop.f32.mrb[26].mxu0  ;;  %v1840_v59 = vpop.f32.mrb[26].mxu1 }
 0x351   :  { %v1842_v60 = vpop.f32.mrb[27].mxu0  ;;  %v891_v61 = vpop.f32.mrb[27].mxu1 }
 0x356   :  { %v1844_v62 = vpop.f32.mrb[28].mxu0  ;;  %v1846_v63 = vpop.f32.mrb[28].mxu1 }
 0x357   :  { %v1848_v14 = vpop.f32.mrb[29].mxu0  ;;  %v896_v0 = vpop.f32.mrb[29].mxu1 }
 0x358   :  { %v819_v3 = vpop.f32.mrb[30].mxu0  ;;  %v897_v4 = vpop.f32.mrb[30].mxu1 }
 0x359   :  { %v821_v16 = vpop.f32.mrb[31].mxu0  ;;  %v899_v5 = vpop.f32.mrb[31].mxu1 }
 0x35e   :  { %v1850_v15 = vpop.f32.mrb[32].mxu0  ;;  %v1852_v6 = vpop.f32.mrb[32].mxu1 }
 0x35f   :  { %v1854_v7 = vpop.f32.mrb[33].mxu0  ;;  %v904_v8 = vpop.f32.mrb[33].mxu1 }
 0x360   :  { %v829_v17 = vpop.f32.mrb[34].mxu0  ;;  %v905_v18 = vpop.f32.mrb[34].mxu1 }
 0x361   :  { %v831_v19 = vpop.f32.mrb[35].mxu0  ;;  %v907_v20 = vpop.f32.mrb[35].mxu1 }
 0x366   :  { %v835_v21 = vpop.f32.mrb[36].mxu0  ;;  %v910_v23 = vpop.f32.mrb[36].mxu1 }
 0x367   :  { %v837_v24 = vpop.f32.mrb[37].mxu0  ;;  %v912_v25 = vpop.f32.mrb[37].mxu1 }
 0x368   :  { %v839_v28 = vpop.f32.mrb[38].mxu0  ;;  %v914_v29 = vpop.f32.mrb[38].mxu1 }
 0x369   :  { %982 = vrot.lane.b32.xlu1 %v839_v28, %s1507_s2  ;;  %v841_v33 = vpop.f32.mrb[39].mxu0  ;;  %v916_v34 = vpop.f32.mrb[39].mxu1 }
 0x36a   :  { %984 = vrot.lane.b32.xlu0 %v841_v33, %s1507_s2 }
 0x36d   :  { %986 = vrot.lane.b32.xlu1 %v914_v29, %s1507_s2 }
 0x36e   :  { %988 = vrot.lane.b32.xlu0 %v916_v34, %s1507_s2  ;;  %v845_v35 = vpop.f32.mrb[40].mxu0  ;;  %v920_v31 = vpop.f32.mrb[40].mxu1 }
 0x36f   :  { %v847_v36 = vpop.f32.mrb[41].mxu0  ;;  %v922_v47 = vpop.f32.mrb[41].mxu1 }
 0x370   :  { %v849_v30 = vpop.f32.mrb[42].mxu0  ;;  %v924_v50 = vpop.f32.mrb[42].mxu1 }
 0x371   :  { %947 = vrot.lane.b32.xlu1 %v819_v3, %s1508_s23  ;;  %v850_v37 = vpop.f32.mrb[43].mxu0  ;;  %v925_v12 = vpop.f32.mrb[43].mxu1 }
 0x372   :  { %949 = vrot.lane.b32.xlu0 %v821_v16, %s1508_s23 }
 0x375   :  { %951 = vrot.lane.b32.xlu1 %v897_v4, %s1508_s23 }
 0x376   :  { %964 = vrot.lane.b32.xlu0 %v829_v17, %s1507_s2 }
 0x379   :  { %966 = vrot.lane.b32.xlu1 %v831_v19, %s1507_s2 }
 0x37a   :  { %968 = vrot.lane.b32.xlu0 %v905_v18, %s1507_s2 }
 0x3db   :  { %v983_v38 = vpop.permute.xlu1 %982 }
 0x3dc   :  { %v985_v32 = vpop.permute.xlu0 %984 }
 0x3dd   :  { %v990_v40 = vsel %vm292_vm1, %v983_v38, %v985_v32 }
 0x3de   :  { %v997_v41 = vadd.f32 %v990_v40, %v835_v21 }
 0x3df   :  { %v987_v42 = vpop.permute.xlu1 %986 }
 0x3e0   :  { %v991_v43 = vsel %vm292_vm1, %v985_v32, %v987_v42  ;;  %1022 = vrot.lane.b32.xlu1 %v997_v41, %s1509_s24  ;;  %v989_v46 = vpop.permute.xlu0 %988 }
 0x3e1   :  { %v998_v48 = vadd.f32 %v991_v43, %v837_v24  ;;  %v992_v49 = vsel %vm292_vm1, %v987_v42, %v989_v46  ;;  %v1000_v39 = vadd.f32 %v989_v46, %v912_v25 }
 0x3e2   :  { %v999_v51 = vadd.f32 %v992_v49, %v910_v23 }
 0x3e3   :  { %v948_v56 = vpop.permute.xlu1 %947  ;;  %1024 = vrot.lane.b32.xlu0 %v998_v48, %s1509_s24 }
 0x3e4   :  { %1026 = vrot.lane.b32.xlu1 %v999_v51, %s1509_s24  ;;  %v950_v61 = vpop.permute.xlu0 %949 }
 0x3e5   :  { %v953_v3 = vsel %vm310_vm2, %v948_v56, %v950_v61 }
 0x3e6   :  { %v958_v16 = vadd.f32 %v953_v3, %v1844_v62 }
 0x3e7   :  { %1028 = vrot.lane.b32.xlu0 %v1000_v39, %s1509_s24  ;;  %v952_v0 = vpop.permute.xlu1 %951 }
 0x3e8   :  { %930 = vrot.lane.b32.xlu1 %v1838_v58, %s1507_s2  ;;  %v954_v4 = vsel %vm310_vm2, %v950_v61, %v952_v0  ;;  %v960_v58 = vadd.f32 %v952_v0, %v1846_v63 }
 0x3e9   :  { %v959_v5 = vadd.f32 %v954_v4, %v1848_v14 }
 0x3eb   :  { %932 = vrot.lane.b32.xlu0 %v1842_v60, %s1507_s2  ;;  %v965_v60 = vpop.permute.xlu0 %964  ;;  %v967_v8 = vpop.permute.xlu1 %966 }
 0x3ec   :  { %934 = vrot.lane.b32.xlu1 %v1840_v59, %s1507_s2  ;;  %v970_v24 = vsel %vm292_vm1, %v965_v60, %v967_v8 }
 0x3ed   :  { %v975_v33 = vadd.f32 %v970_v24, %v1850_v15 }
 0x3ef   :  { %1004 = vrot.lane.b32.xlu0 %v958_v16, %s1510_s25  ;;  %v969_v17 = vpop.permute.xlu0 %968 }
 0x3f0   :  { %1006 = vrot.lane.b32.xlu1 %v959_v5, %s1510_s25  ;;  %v971_v62 = vsel %vm292_vm1, %v967_v8, %v969_v17  ;;  %v977_v63 = vadd.f32 %v969_v17, %v1852_v6  ;;  %v584_v6 = vrot.slane %v1820_v9, 1 }
 0x3f1   :  { %v976_v14 = vadd.f32 %v971_v62, %v1854_v7 }
 0x3f3   :  { %1008 = vrot.lane.b32.xlu0 %v960_v58, %s1510_s25 }
 0x3f4   :  { %1062 = vrot.lane.b32.xlu1 %v847_v36, %s1511_s28 }
 0x3f7   :  { %1060 = vrot.lane.b32.xlu0 %v845_v35, %s1511_s28 }
 0x452   :  { %v1023_v59 = vpop.permute.xlu1 %1022 }
 0x455   :  { %v1025_v18 = vpop.permute.xlu0 %1024 }
 0x456   :  { %v1027_v19 = vpop.permute.xlu1 %1026  ;;  %v1030_v29 = vsel %vm389_vm3, %v1023_v59, %v1025_v18 }
 0x457   :  { %v1031_v20 = vsel %vm389_vm3, %v1025_v18, %v1027_v19  ;;  %v1036_v7 = vadd.f32 %v1030_v29, %v975_v33 }
 0x458   :  { %v1037_v21 = vadd.f32 %v1031_v20, %v976_v14 }
 0x459   :  { %v1029_v23 = vpop.permute.xlu0 %1028 }
 0x45a   :  { %v1032_v25 = vsel %vm389_vm3, %v1027_v19, %v1029_v23  ;;  %1044 = vrot.lane.b32.xlu0 %v1037_v21, %s1512_s3  ;;  %v931_v35 = vpop.permute.xlu1 %930 }
 0x45b   :  { %v1038_v28 = vadd.f32 %v1032_v25, %v977_v63 }
 0x45d   :  { %1046 = vrot.lane.b32.xlu1 %v1038_v28, %s1512_s3  ;;  %v933_v34 = vpop.permute.xlu0 %932 }
 0x45e   :  { %1064 = vrot.lane.b32.xlu0 %v920_v31, %s1511_s28  ;;  %v935_v30 = vpop.permute.xlu1 %934  ;;  %v936_v43 = vsel %vm292_vm1, %v931_v35, %v933_v34 }
 0x45f   :  { %v937_v31 = vsel %vm292_vm1, %v933_v34, %v935_v30  ;;  %v941_v51 = vadd.f32 %v936_v43, %v1832_v13  ;;  %v943_v39 = vadd.f32 %v935_v30, %v1834_v1 }
 0x460   :  { %v942_v42 = vadd.f32 %v937_v31, %v1836_v57  ;;  %v586_v31 = vrot.slane %v1822_v10, 1 }
 0x461   :  { %1042 = vrot.lane.b32.xlu1 %v1036_v7, %s1512_s3  ;;  %v1005_v36 = vpop.permute.xlu0 %1004 }
 0x462   :  { %v1007_v37 = vpop.permute.xlu1 %1006 }
 0x463   :  { %v1010_v48 = vsel %vm368_vm5, %v1005_v36, %v1007_v37 }
 0x464   :  { %v1015_v61 = vadd.f32 %v1010_v48, %v941_v51 }
 0x465   :  { %1066 = vrot.lane.b32.xlu1 %v922_v47, %s1511_s28  ;;  %v1009_v15 = vpop.permute.xlu0 %1008 }
 0x466   :  { %v1063_v32 = vpop.permute.xlu1 %1062  ;;  %v1011_v40 = vsel %vm368_vm5, %v1007_v37, %v1009_v15  ;;  %v1017_v4 = vadd.f32 %v1009_v15, %v943_v39 }
 0x467   :  { %v1016_v46 = vadd.f32 %v1011_v40, %v942_v42  ;;  %v585_v40 = vrot.slane %v1824_v11, 1 }
 0x469   :  { %587 = vrot.lane.b32.xlu1 %v584_v6, %s1507_s2  ;;  %v1061_v38 = vpop.permute.xlu0 %1060 }
 0x46a   :  { %v1068_v58 = vsel %vm429_vm7, %v1061_v38, %v1063_v32 }
 0x4cc   :  { %v1045_v41 = vpop.permute.xlu0 %1044 }
 0x4cf   :  { %v1047_v47 = vpop.permute.xlu1 %1046 }
 0x4d0   :  { %v1049_v49 = vsel %vm408_vm6, %v1045_v41, %v1047_v47  ;;  %v1065_v50 = vpop.permute.xlu0 %1064  ;;  %v1055_v60 = vadd.f32 %v1047_v47, %v1017_v4 }
 0x4d1   :  { %v1054_v12 = vadd.f32 %v1049_v49, %v1016_v46  ;;  %v1069_v56 = vsel %vm429_vm7, %v1063_v32, %v1065_v50 }
 0x4d3   :  { %v1075_v0 = vadd.f32 %v1069_v56, %v1054_v12  ;;  %v1043_v3 = vpop.permute.xlu1 %1042 }
 0x4d4   :  { %v1048_v57 = vsel %vm408_vm6, %v1043_v3, %v1045_v41 }
 0x4d5   :  { %v1078_v16 = vadd.f32 %v1075_v0, %v1714_v44  ;;  %v1053_v5 = vadd.f32 %v1048_v57, %v1015_v61 }
 0x4d7   :  { %vm1081_vm13 = vcmp.gt.f32.partialorder %v1078_v16, 0.0  ;;  %v1084_v8 = vmul.f32 0.01, %v1078_v16  ;;  %v1074_v13 = vadd.f32 %v1068_v58, %v1053_v5  ;;  %v1067_v17 = vpop.permute.xlu1 %1066 }
 0x4d8   :  { %v1070_v59 = vsel %vm429_vm7, %v1065_v50, %v1067_v17 }
 0x4d9   :  { %v1077_v1 = vadd.f32 %v1074_v13, %v1714_v44  ;;  %v1076_v62 = vadd.f32 %v1070_v59, %v1055_v60  ;;  %v1087_v18 = vsel %vm1081_vm13, %v1078_v16, %v1084_v8 }
 0x4da   :  { %v1090_v14 = vmul.f32 %v1087_v18, %v1743_v26 }
 0x4db   :  { %v1083_v19 = vmul.f32 0.01, %v1077_v1  ;;  %v1079_v20 = vadd.f32 %v1076_v62, %v1714_v44  ;;  %vm1080_vm14 = vcmp.gt.f32.partialorder %v1077_v1, 0.0  ;;  %v588_v41 = vpop.permute.xlu1 %587 }
 0x4dc   :  { %v1093_v21 = vpack.c.bf16 %v1090_v14, %v1090_v14 }
 0x4dd   :  { %v1085_v63 = vmul.f32 0.01, %v1079_v20  ;;  %v1086_v23 = vsel %vm1080_vm14, %v1077_v1, %v1083_v19  ;;  %vm1082_vm15 = vcmp.gt.f32.partialorder %v1079_v20, 0.0 }
 0x4de   :  { %1419 = vmatprep.subr.msk.bf16.mxu0 %vm487_vm11, %v1093_v21  ;;  %v1089_v24 = vmul.f32 %v1086_v23, %v1739_v22 }
 0x4df   :  { %v1088_v25 = vsel %vm1082_vm15, %v1079_v20, %v1085_v63 }
 0x4e0   :  { %v1092_v28 = vpack.c.bf16 %v1089_v24, %v1089_v24  ;;  %v1091_v29 = vmul.f32 %v1088_v25, %v1745_v27  ;;  %v11_v27 = vstv %s2066_s5 }
 0x4e1   :  { %12 = vst [vmem:[#allocation2] sm:$0x1] %v11_v27 }
 0x4e2   :  { %v1096_v33 = vsel %vm487_vm11, %v1092_v28, 0  ;;  %v1094_v7 = vpack.c.bf16 %v1091_v29, %v1091_v29 }
 0x4e3   :  { %1105 = vmatpush1.bf16.msra.mxu0 %v1096_v33 }
 0x4e4   :  { %v1102_v26 = vsel %vm487_vm11, %v1094_v7, 0 }
 0x4e5   :  { %1436 = vmatpush3.bf16.msra.mxu1 %v1102_v26 }
 0x4e6   :  { %1420 = vmatmul.mubr.msk.bf16.vlgmr.msra.gmra.mrb[44].mxu0 %vm483_vm12, %v1762_v45 }
 0x4e8   :  { %1438 = vmatmul.mubr.msk.bf16.vlgmr.msra.gmra.mrb[44].mxu1 %vm483_vm12, %v1762_v45  ;;  %v39_v58 = vld [vmem:[#allocation2] sm:$0x1] }
 0x5b9   :  { %v1931_v44 = vpop.f32.mrb[44].mxu0 }
 0x5ba   :  { %v1933_v22 = vpop.f32.mrb[45].mxu0  ;;  %v1191_v38 = vrot.slane %v1931_v44, 1 }
 0x5bb   :  { %v1192_v34 = vrot.slane %v1933_v22, 1  ;;  %v1181_v35 = vpop.f32.mrb[44].mxu1  ;;  %v1939_v36 = vpop.f32.mrb[46].mxu0 }
 0x5bc   :  { %v1193_v30 = vrot.slane %v1181_v35, 1  ;;  %v1439_v15 = vpop.f32.mrb[45].mxu1  ;;  %v1941_v37 = vpop.f32.mrb[47].mxu0 }
 0x5bd   :  { %1196 = vrot.lane.b32.xlu1 %v1192_v34, %s1507_s2  ;;  %v1944_v45 = vpop.f32.mrb[46].mxu1 }
 0x5be   :  { %1198 = vrot.lane.b32.xlu0 %v1193_v30, %s1507_s2  ;;  %v1440_v32 = vpop.f32.mrb[47].mxu1 }
 0x5c1   :  { %591 = vrot.lane.b32.xlu1 %v586_v31, %s1507_s2 }
 0x5c2   :  { %1194 = vrot.lane.b32.xlu0 %v1191_v38, %s1507_s2 }
 0x5c5   :  { %601 = vrot.lane.b32.xlu1 %v584_v6, %s1508_s23 }
 0x5c6   :  { %589 = vrot.lane.b32.xlu0 %v585_v40, %s1507_s2 }
 0x5c9   :  { %605 = vrot.lane.b32.xlu1 %v586_v31, %s1508_s23 }
 0x5ca   :  { %1208 = vrot.lane.b32.xlu0 %v1191_v38, %s1508_s23 }
 0x5ce   :  { %1212 = vrot.lane.b32.xlu0 %v1193_v30, %s1508_s23 }
 0x5d2   :  { %603 = vrot.lane.b32.xlu0 %v585_v40, %s1508_s23 }
 0x62f   :  { %v1197_v46 = vpop.permute.xlu1 %1196 }
 0x630   :  { %v1199_v42 = vpop.permute.xlu0 %1198 }
 0x631   :  { %v1960_v43 = vadd.f32 %v1199_v42, %v1181_v35  ;;  %v1201_v16 = vsel %vm292_vm1, %v1197_v46, %v1199_v42 }
 0x632   :  { %v1984_v60 = vadd.f32 %v1201_v16, %v1933_v22 }
 0x633   :  { %v1247_v47 = vrot.slane %v1960_v43, 2  ;;  %v592_v50 = vpop.permute.xlu1 %591 }
 0x634   :  { %v1195_v48 = vpop.permute.xlu0 %1194  ;;  %v1988_v13 = vadd.f32 %v592_v50, %v1822_v10  ;;  %v1246_v59 = vrot.slane %v1984_v60, 2 }
 0x635   :  { %v1200_v6 = vsel %vm292_vm1, %v1195_v48, %v1197_v46  ;;  %1252 = vrot.lane.b32.xlu0 %v1247_v47, %s1509_s24 }
 0x636   :  { %v1966_v49 = vadd.f32 %v1200_v6, %v1931_v44  ;;  %v640_v21 = vrot.slane %v1988_v13, 2 }
 0x637   :  { %v602_v5 = vpop.permute.xlu1 %601 }
 0x638   :  { %v590_v51 = vpop.permute.xlu0 %589  ;;  %v1245_v12 = vrot.slane %v1966_v49, 2 }
 0x639   :  { %v593_v56 = vsel %vm292_vm1, %v588_v41, %v590_v51  ;;  %v594_v39 = vsel %vm292_vm1, %v590_v51, %v592_v50  ;;  %vm1353_vm1 = vcmask 1041408  }
 0x63a   :  { %v1972_v61 = vadd.f32 %v593_v56, %v1820_v9  ;;  %v1975_v0 = vadd.f32 %v594_v39, %v1824_v11  ;;  %1248 = vrot.lane.b32.xlu0 %v1245_v12, %s1509_s24 }
 0x63b   :  { %v606_v1 = vpop.permute.xlu1 %605 }
 0x63c   :  { %v1209_v3 = vpop.permute.xlu0 %1208  ;;  %v638_v57 = vrot.slane %v1972_v61, 2  ;;  %v639_v4 = vrot.slane %v1975_v0, 2  ;;  %v614_v14 = vadd.f32 %v606_v1, %v1822_v10 }
 0x63e   :  { %641 = vrot.lane.b32.xlu1 %v638_v57, %s1509_s24  ;;  %643 = vrot.lane.b32.xlu0 %v639_v4, %s1509_s24  ;;  %v620_v23 = vrot.slane %v614_v14, 2 }
 0x640   :  { %v1213_v8 = vpop.permute.xlu0 %1212 }
 0x641   :  { %v1221_v19 = vadd.f32 %v1213_v8, %v1181_v35 }
 0x642   :  { %1210 = vrot.lane.b32.xlu1 %v1192_v34, %s1508_s23  ;;  %694 = vperm.xlu0 %1451, %v39_v58  }
 0x643   :  { %v1227_v24 = vrot.slane %v1221_v19, 2 }
 0x644   :  { %v604_v17 = vpop.permute.xlu0 %603 }
 0x645   :  { %v607_v62 = vsel %vm310_vm2, %v602_v5, %v604_v17  ;;  %v608_v63 = vsel %vm310_vm2, %v604_v17, %v606_v1 }
 0x646   :  { %v612_v18 = vadd.f32 %v607_v62, %v1820_v9  ;;  %1250 = vrot.lane.b32.xlu1 %v1246_v59, %s1509_s24  ;;  %v613_v25 = vadd.f32 %v608_v63, %v1824_v11 }
 0x648   :  { %v618_v20 = vrot.slane %v612_v18, 2  ;;  %v619_v9 = vrot.slane %v613_v25, 2 }
 0x64a   :  { %645 = vrot.lane.b32.xlu1 %v640_v21, %s1509_s24  ;;  %621 = vrot.lane.b32.xlu0 %v618_v20, %s1510_s25 }
 0x64e   :  { %1232 = vrot.lane.b32.xlu1 %v1227_v24, %s1510_s25  ;;  %625 = vrot.lane.b32.xlu0 %v620_v23, %s1510_s25 }
 0x652   :  { %623 = vrot.lane.b32.xlu1 %v619_v9, %s1510_s25 }
 0x6a7   :  { %v1253_v10 = vpop.permute.xlu0 %1252 }
 0x6ac   :  { %v1249_v28 = vpop.permute.xlu0 %1248 }
 0x6b0   :  { %v644_v29 = vpop.permute.xlu0 %643  ;;  %v642_v33 = vpop.permute.xlu1 %641 }
 0x6b1   :  { %v647_v7 = vsel %vm389_vm3, %v642_v33, %v644_v29 }
 0x6b2   :  { %v652_v26 = vadd.f32 %v647_v7, %v1972_v61 }
 0x6b4   :  { %v658_v27 = vrot.slane %v652_v26, 4  ;;  %v1211_v34 = vpop.permute.xlu1 %1210 }
 0x6b5   :  { %v1215_v40 = vsel %vm310_vm2, %v1211_v34, %v1213_v8  ;;  %v1214_v41 = vsel %vm310_vm2, %v1209_v3, %v1211_v34  ;;  %vm1354_vm2 = vcmask 1043458  }
 0x6b6   :  { %661 = vrot.lane.b32.xlu0 %v658_v27, %s1512_s3  ;;  %v1220_v42 = vadd.f32 %v1215_v40, %v1933_v22  ;;  %v1219_v46 = vadd.f32 %v1214_v41, %v1931_v44 }
 0x6b8   :  { %v1251_v11 = vpop.permute.xlu1 %1250  ;;  %v1226_v48 = vrot.slane %v1220_v42, 2  ;;  %v1225_v50 = vrot.slane %v1219_v46, 2 }
 0x6b9   :  { %v1255_v47 = vsel %vm389_vm3, %v1251_v11, %v1253_v10 }
 0x6ba   :  { %v1260_v6 = vadd.f32 %v1255_v47, %v1984_v60 }
 0x6bc   :  { %v646_v35 = vpop.permute.xlu1 %645  ;;  %v1266_v44 = vrot.slane %v1260_v6, 4 }
 0x6bd   :  { %v648_v30 = vsel %vm389_vm3, %v644_v29, %v646_v35  ;;  %v654_v15 = vadd.f32 %v646_v35, %v1988_v13 }
 0x6be   :  { %v653_v38 = vadd.f32 %v648_v30, %v1975_v0 }
 0x6bf   :  { %v660_v32 = vrot.slane %v654_v15, 4 }
 0x6c0   :  { %v659_v31 = vrot.slane %v653_v38, 4  ;;  %v1233_v56 = vpop.permute.xlu1 %1232 }
 0x6c1   :  { %665 = vrot.lane.b32.xlu0 %v660_v32, %s1512_s3  ;;  %v1241_v62 = vadd.f32 %v1233_v56, %v1960_v43 }
 0x6c2   :  { %663 = vrot.lane.b32.xlu1 %v659_v31, %s1512_s3 }
 0x6c4   :  { %v624_v57 = vpop.permute.xlu1 %623 }
 0x6c5   :  { %1287 = vrot.lane.b32.xlu0 %v1941_v37, %s1511_s28  ;;  %v1261_v37 = vadd.f32 %v1253_v10, %v1960_v43 }
 0x6c6   :  { %1285 = vrot.lane.b32.xlu1 %v1939_v36, %s1511_s28  ;;  %v1254_v36 = vsel %vm389_vm3, %v1249_v28, %v1251_v11  ;;  %vm1355_vm3 = vmor %vm1354_vm2, %vm1353_vm1 }
 0x6c7   :  { %v1267_v22 = vrot.slane %v1261_v37, 4  ;;  %v1259_v51 = vadd.f32 %v1254_v36, %v1966_v49 }
 0x6c9   :  { %678 = vrot.lane.b32.xlu0 %v1826_v52, %s1511_s28  ;;  %v1265_v52 = vrot.slane %v1259_v51, 4 }
 0x6ca   :  { %1289 = vrot.lane.b32.xlu1 %v1944_v45, %s1511_s28  ;;  %v695_v45 = vpop.permute.xlu0 %694 }
 0x6cb   :  { %v700_v9 = vrot.slane %v695_v45, %v459_v2 }
 0x6cd   :  { %1230 = vrot.lane.b32.xlu0 %v1226_v48, %s1510_s25 }
 0x6ce   :  { %1228 = vrot.lane.b32.xlu1 %v1225_v50, %s1510_s25  ;;  %v622_v12 = vpop.permute.xlu0 %621 }
 0x6cf   :  { %v627_v23 = vsel %vm368_vm5, %v622_v12, %v624_v57 }
 0x6d0   :  { %v632_v27 = vadd.f32 %v627_v23, %v1972_v61 }
 0x6d1   :  { %1270 = vrot.lane.b32.xlu0 %v1266_v44, %s1512_s3 }
 0x6d2   :  { %1272 = vrot.lane.b32.xlu1 %v1267_v22, %s1512_s3  ;;  %v626_v39 = vpop.permute.xlu0 %625 }
 0x6d3   :  { %v628_v43 = vsel %vm368_vm5, %v624_v57, %v626_v39 }
 0x6d4   :  { %v633_v35 = vadd.f32 %v628_v43, %v1975_v0 }
 0x6d5   :  { %682 = vrot.lane.b32.xlu0 %v1828_v53, %s1511_s28 }
 0x6d6   :  { %1268 = vrot.lane.b32.xlu1 %v1265_v52, %s1512_s3 }
 0x6da   :  { %680 = vrot.lane.b32.xlu1 %v1830_v55, %s1511_s28  ;;  %v634_v55 = vadd.f32 %v626_v39, %v1988_v13 }
 0x728   :  { %v662_v3 = vpop.permute.xlu0 %661 }
 0x733   :  { %v666_v4 = vpop.permute.xlu0 %665 }
 0x734   :  { %v664_v16 = vpop.permute.xlu1 %663  ;;  %v674_v24 = vadd.f32 %v666_v4, %v634_v55 }
 0x735   :  { %v668_v34 = vsel %vm408_vm6, %v664_v16, %v666_v4 }
 0x737   :  { %v1288_v5 = vpop.permute.xlu0 %1287 }
 0x738   :  { %v1286_v58 = vpop.permute.xlu1 %1285 }
 0x739   :  { %v1291_v31 = vsel %vm429_vm7, %v1286_v58, %v1288_v5 }
 0x73b   :  { %v679_v8 = vpop.permute.xlu0 %678 }
 0x73c   :  { %v1290_v17 = vpop.permute.xlu1 %1289 }
 0x73d   :  { %v1292_v10 = vsel %vm429_vm7, %v1288_v5, %v1290_v17 }
 0x73f   :  { %v1231_v59 = vpop.permute.xlu0 %1230 }
 0x740   :  { %v1229_v1 = vpop.permute.xlu1 %1228  ;;  %v1235_v53 = vsel %vm368_vm5, %v1231_v59, %v1233_v56 }
 0x741   :  { %v1240_v14 = vadd.f32 %v1235_v53, %v1984_v60  ;;  %v1234_v20 = vsel %vm368_vm5, %v1229_v1, %v1231_v59  ;;  %v667_v60 = vsel %vm408_vm6, %v662_v3, %v664_v16  ;;  %vm1357_vm5 = vmor %vm1356_vm4, %vm1355_vm3 }
 0x742   :  { %v1239_v29 = vadd.f32 %v1234_v20, %v1966_v49  ;;  %v672_v32 = vadd.f32 %v667_v60, %v632_v27  ;;  %v673_v49 = vadd.f32 %v668_v34, %v633_v35 }
 0x743   :  { %v1271_v18 = vpop.permute.xlu0 %1270 }
 0x744   :  { %v1273_v19 = vpop.permute.xlu1 %1272 }
 0x745   :  { %v1275_v21 = vsel %vm408_vm6, %v1271_v18, %v1273_v19  ;;  %v1281_v63 = vadd.f32 %v1273_v19, %v1241_v62 }
 0x746   :  { %v1280_v25 = vadd.f32 %v1275_v21, %v1240_v14 }
 0x747   :  { %v1298_v13 = vadd.f32 %v1290_v17, %v1281_v63  ;;  %v683_v28 = vpop.permute.xlu0 %682  ;;  %v1515_v17 = vmov 1983009808  }
 0x748   :  { %v1297_v33 = vadd.f32 %v1292_v10, %v1280_v25  ;;  %v691_v7 = vadd.f32 %v683_v28, %v674_v24  ;;  %v1269_v26 = vpop.permute.xlu1 %1268  ;;  %v1338_v59 = vunpack.c.l.s4 %v1515_v17 }
 0x749   :  { %v1301_v11 = vadd.f32 %v1298_v13, %v700_v9  ;;  %v1274_v2 = vsel %vm408_vm6, %v1269_v26, %v1271_v18 }
 0x74a   :  { %v1300_v30 = vadd.f32 %v1297_v33, %v700_v9  ;;  %v703_v15 = vadd.f32 %v700_v9, %v691_v7  ;;  %v1279_v38 = vadd.f32 %v1274_v2, %v1239_v29  ;;  %v1339_v62 = vunpack.c.0.s8 %v1338_v59 }
 0x74b   :  { %v1424_v40 = vmul.f32 -1.442695, %v1301_v11 }
 0x74c   :  { %v1423_v41 = vmul.f32 -1.442695, %v1300_v30  ;;  %v1392_v42 = vmul.f32 -1.442695, %v703_v15  ;;  %v1296_v46 = vadd.f32 %v1291_v31, %v1279_v38  ;;  %v681_v47 = vpop.permute.xlu1 %680  ;;  %v1342_v23 = vsub.s32 %v1339_v62, %v1721_v54 }
 0x74d   :  { %1482 = vpow2.f32 %v1424_v40  ;;  %v684_v61 = vsel %vm429_vm7, %v679_v8, %v681_v47  ;;  %v685_v48 = vsel %vm429_vm7, %v681_v47, %v683_v28 }
 0x74e   :  { %1484 = vpow2.f32 %v1423_v41  ;;  %v1299_v6 = vadd.f32 %v1296_v46, %v700_v9  ;;  %v689_v0 = vadd.f32 %v684_v61, %v672_v32  ;;  %v690_v37 = vadd.f32 %v685_v48, %v673_v49 }
 0x74f   :  { %1486 = vpow2.f32 %v1392_v42 }
 0x750   :  { %v1422_v50 = vmul.f32 -1.442695, %v1299_v6  ;;  %v701_v36 = vadd.f32 %v700_v9, %v689_v0  ;;  %v702_v44 = vadd.f32 %v700_v9, %v690_v37 }
 0x752   :  { %1488 = vpow2.f32 %v1422_v50  ;;  %v1390_v22 = vmul.f32 -1.442695, %v701_v36  ;;  %v1391_v51 = vmul.f32 -1.442695, %v702_v44 }
 0x754   :  { %1490 = vpow2.f32 %v1390_v22 }
 0x755   :  { %1492 = vpow2.f32 %v1391_v51 }
 0x757   :  { %v1483_v52 = vpop.eup %1482 }
 0x758   :  { %v1485_v45 = vpop.eup %1484  ;;  %v1313_v12 = vadd.f32 1.0, %v1483_v52 }
 0x759   :  { %v1487_v56 = vpop.eup %1486  ;;  %v1312_v39 = vadd.f32 1.0, %v1485_v45 }
 0x75a   :  { %1494 = vrcp.f32 %v1313_v12  ;;  %v715_v57 = vadd.f32 1.0, %v1487_v56 }
 0x75b   :  { %1496 = vrcp.f32 %v1312_v39 }
 0x75c   :  { %v1489_v3 = vpop.eup %1488 }
 0x75d   :  { %v1311_v4 = vadd.f32 1.0, %v1489_v3 }
 0x75e   :  { %v1491_v16 = vpop.eup %1490 }
 0x75f   :  { %v1493_v5 = vpop.eup %1492  ;;  %1498 = vrcp.f32 %v1311_v4  ;;  %v713_v58 = vadd.f32 1.0, %v1491_v16 }
 0x760   :  { %1500 = vrcp.f32 %v715_v57  ;;  %v714_v8 = vadd.f32 1.0, %v1493_v5 }
 0x761   :  { %1502 = vrcp.f32 %v713_v58 }
 0x762   :  { %1504 = vrcp.f32 %v714_v8 }
 0x764   :  { %v1495_v1 = vpop.eup %1494 }
 0x765   :  { %v1497_v53 = vpop.eup %1496  ;;  %v1325_v55 = vrot.slane %v1495_v1, 7 }
 0x766   :  { %v1324_v21 = vrot.slane %v1497_v53, 7 }
 0x769   :  { %v1499_v18 = vpop.eup %1498 }
 0x76a   :  { %v1501_v14 = vpop.eup %1500  ;;  %v1323_v19 = vrot.slane %v1499_v18, 7 }
 0x76b   :  { %v1503_v20 = vpop.eup %1502  ;;  %v1332_v25 = vsel %vm1329_vm0, %v1501_v14, %v1325_v55 }
 0x76c   :  { %v1505_v63 = vpop.eup %1504  ;;  %v1330_v24 = vsel %vm1329_vm0, %v1503_v20, %v1323_v19  ;;  %v1350_v10 = vrot.slane %v1332_v25, %v1342_v23 }
 0x76d   :  { %v1331_v9 = vsel %vm1329_vm0, %v1505_v63, %v1324_v21 }
 0x76e   :  { %v1336_v43 = vcombine.low %v1330_v24, %v1331_v9 }
 0x770   :  { %v1343_v13 = vrot.slane %v1336_v43, %v1342_v23 }
 0x772   :  { %v1351_v28 = vcombine.low %v1343_v13, %v1350_v10 }
 0x774   :  { %1358 = vst.msk [vmem:[%s2067_s6] sm:$0x3f] %vm1357_vm5, %v1351_v28 }

</bundles_post_ra>
